<compile_context>
chip_gen: v5e
topology: v5e:2x2
jax: 0.10.0
libtpu: 0.0.40
codegen_flags: <defaults>
</compile_context>

<pallas_src>
import jax
import jax.numpy as jnp
from jax.experimental import pallas as pl
from jax.experimental.pallas import tpu as pltpu


_STEP_INPUT_BUDGET = 2 * 1024 * 1024  # ~2 MiB of input per grid step (double-buffered by Pallas)


def _masked_stats_kernel(fm_ref, m_ref, out_ref,
                         k_acc, s_acc, ss_acc, l1_acc, mx_acc, mn_acc):
    h = pl.program_id(1)  # HW-chunk axis ("arbitrary", reduction)

    @pl.when(h == 0)
    def _init():
        k_acc[...] = jnp.zeros_like(k_acc)
        s_acc[...] = jnp.zeros_like(s_acc)
        ss_acc[...] = jnp.zeros_like(ss_acc)
        l1_acc[...] = jnp.zeros_like(l1_acc)
        mx_acc[...] = jnp.full(mx_acc.shape, -jnp.inf, jnp.float32)
        mn_acc[...] = jnp.full(mn_acc.shape, jnp.inf, jnp.float32)

    x = fm_ref[...].astype(jnp.float32)   # (Bt, HWc, C): spatial on sublanes, channels on lanes
    m = m_ref[...]                        # (Bt, HWc, 1): {0,1} f32 gland mask
    sel = m > 0.5                         # single broadcast mask, reused for max and min

    xm = x * m                            # mask applied once, reused for sum / sumsq / L1
    k_acc[...] += jnp.sum(m, axis=1)                    # (Bt,1) gland pixel count
    s_acc[...] += jnp.sum(xm, axis=1)                   # (Bt,C) sublane (VALU) reductions
    ss_acc[...] += jnp.sum(x * xm, axis=1)
    l1_acc[...] += jnp.sum(jnp.abs(xm), axis=1)         # |x|*m == |x*m| since m in {0,1}
    mx_acc[...] = jnp.maximum(mx_acc[...],
                              jnp.max(jnp.where(sel, x, -jnp.inf), axis=1))
    mn_acc[...] = jnp.minimum(mn_acc[...],
                              jnp.min(jnp.where(sel, x, jnp.inf), axis=1))

    @pl.when(h == pl.num_programs(1) - 1)
    def _finalize():
        k = k_acc[...]                    # (Bt,1)
        s = s_acc[...]                    # (Bt,C)
        mean = s / k
        var = (ss_acc[...] - s * s / k) / (k - 1.0)     # unbiased, like torch.Tensor.var
        # Lane-dense row stores (C on lanes); row order matches
        # torch.cat([means, medians, varns, maxs, mins, norms]).
        out_ref[:, 0:1, :] = mean[:, None, :]
        out_ref[:, 1:2, :] = mean[:, None, :]           # "median" in the reference is (sic) a mean
        out_ref[:, 2:3, :] = var[:, None, :]
        out_ref[:, 3:4, :] = mx_acc[...][:, None, :]
        out_ref[:, 4:5, :] = mn_acc[...][:, None, :]
        out_ref[:, 5:6, :] = l1_acc[...][:, None, :]


def _divisors_desc(n):
    return [d for d in range(n, 0, -1) if n % d == 0]


def _choose_tiling(B, HW, C, fm_elem_bytes, budget=_STEP_INPUT_BUDGET):
    """Pick (batch tile Bt, HW chunk HWc) so each grid step moves ~budget bytes."""
    bytes_per_pixel = C * fm_elem_bytes + 4            # feature row + f32 mask element
    full_sample = HW * bytes_per_pixel

    bt = 1
    if full_sample <= budget:
        for d in _divisors_desc(B):
            # Keep >=2 steps on the parallel batch axis (2 TensorCores on v7x).
            if d * full_sample <= budget and (B // d >= 2 or B == 1):
                bt = d
                break

    if bt * full_sample <= budget:
        hwc = HW
    else:
        hwc = HW
        for d in _divisors_desc(HW):
            if d % 8 == 0 and bt * d * bytes_per_pixel <= budget:
                hwc = d
                break
        # TODO(synk): if HW has no suitable multiple-of-8 divisor we fall back to the
        # full map in one chunk, which may exceed the per-step VMEM budget for odd sizes.
    return bt, hwc


def masked_stats(fm, mask):
    """fm: (B,C,H,W) any float dtype, mask: (B,H,W) bool -> (B, 6*C) gland stats."""
    B, C, H, W = fm.shape
    HW = H * W
    # Sublane-major spatial layout: (B, HW, C) feature maps, (B, HW, 1) mask.
    fm_t = jnp.transpose(fm.reshape(B, C, HW), (0, 2, 1))       # native dtype, no f32 cast here
    m_t = mask.reshape(B, HW, 1).astype(jnp.float32)

    bt, hwc = _choose_tiling(B, HW, C, jnp.dtype(fm.dtype).itemsize)
    grid = (B // bt, HW // hwc)

    out = pl.pallas_call(
        _masked_stats_kernel,
        out_shape=jax.ShapeDtypeStruct((B, 6, C), jnp.float32),
        grid=grid,
        in_specs=[
            pl.BlockSpec((bt, hwc, C), lambda b, h: (b, h, 0)),
            pl.BlockSpec((bt, hwc, 1), lambda b, h: (b, h, 0)),
        ],
        # Output block is resident across the HW ("arbitrary") axis; written once at the end.
        out_specs=pl.BlockSpec((bt, 6, C), lambda b, h: (b, 0, 0)),
        scratch_shapes=[
            pltpu.VMEM((bt, 1), jnp.float32),   # k   (gland pixel count)
            pltpu.VMEM((bt, C), jnp.float32),   # sum
            pltpu.VMEM((bt, C), jnp.float32),   # sum of squares
            pltpu.VMEM((bt, C), jnp.float32),   # L1
            pltpu.VMEM((bt, C), jnp.float32),   # running max
            pltpu.VMEM((bt, C), jnp.float32),   # running min
        ],
        compiler_params=pltpu.CompilerParams(
            dimension_semantics=("parallel", "arbitrary"),
            vmem_limit_bytes=32 * 1024 * 1024,
        ),
    )(fm_t, m_t)

    # (B,6,C) -> (B,6C): [means(C), medians(C), varns(C), maxs(C), mins(C), norms(C)]
    return out.reshape(B, 6 * C)


def _intrplt(gts, sl):
    # F.interpolate(mode='bilinear', align_corners=False) equivalent.
    B, C, _, _ = gts.shape
    return jax.image.resize(gts.astype(jnp.float32), (B, C, sl, sl),
                            method="bilinear", antialias=False)


class SummariserOfFeatures:
    """JAX/Pallas port of the PyTorch SummariserOfFeatures module (no weights)."""

    def __init__(self, N):
        self.N = N

    def __call__(self, feature_maps, gts):
        gf = self.summary_net_features(gts, feature_maps)
        if self.N:
            gf = gf.reshape(gf.shape[0] // (self.N + 1), self.N + 1, -1)
            gf = gf.mean(axis=1)
        return gf

    def summary_net_features(self, gts, feature_maps):
        fm_side_lens = sorted({int(fm.shape[3]) for fm in feature_maps}, reverse=True)
        gt_sizes = [int(gts.shape[3])] + fm_side_lens
        matched_gts = [gts.astype(jnp.uint8)]
        matched_gts += [_intrplt(gts, sl).astype(jnp.uint8) for sl in fm_side_lens]

        # TODO(synk): the try/except RuntimeError fallback for empty glands
        # (torch.zeros(C,1) path) is not replicated; only non-empty masks are handled.
        per_fm = []
        for fm in feature_maps:
            gt_b = matched_gts[gt_sizes.index(int(fm.shape[3]))]   # (B,1,sl,sl) uint8
            mask = gt_b[:, 0] != 0                                 # byte-mask indexing semantics
            per_fm.append(masked_stats(fm, mask))                  # (B, 6*C_i)
        # per-sample: [stats(fm0); stats(fm1); ...] == torch.cat over feature maps
        return jnp.concatenate(per_fm, axis=1)


if __name__ == "__main__":
    key = jax.random.PRNGKey(0)
    N = 1
    B = 4  # batch must be divisible by N+1

    # gts: NCHW binary gland mask with a solid interior so every downsample is non-empty
    gts = jnp.zeros((B, 1, 16, 16), jnp.float32)
    gts = gts.at[:, :, 2:14, 2:14].set(1.0)

    k1, k2 = jax.random.split(key)
    fm1 = jax.random.normal(k1, (B, 4, 8, 8), jnp.float32)
    fm2 = jax.random.normal(k2, (B, 8, 4, 4), jnp.float32)

    model = SummariserOfFeatures(N)
    out = model([fm1, fm2], gts)
    jax.block_until_ready(out)

    expected = (B // (N + 1), 6 * (4 + 8))
    assert out.shape == expected, (out.shape, expected)
    assert bool(jnp.all(jnp.isfinite(out)))
    print("KERNEL_OK")
</pallas_src>

<mosaic_0001>
module attributes {stable_mosaic.version = 11 : i64} {
  func.func @_masked_stats_kernel(%arg0: i32, %arg1: i32, %arg2: memref<2x64x4xf32, #tpu.memory_space<vmem>>, %arg3: memref<2x64x1xf32, #tpu.memory_space<vmem>>, %arg4: memref<2x6x4xf32, #tpu.memory_space<vmem>>, %arg5: memref<2x1xf32, #tpu.memory_space<vmem>>, %arg6: memref<2x4xf32, #tpu.memory_space<vmem>>, %arg7: memref<2x4xf32, #tpu.memory_space<vmem>>, %arg8: memref<2x4xf32, #tpu.memory_space<vmem>>, %arg9: memref<2x4xf32, #tpu.memory_space<vmem>>, %arg10: memref<2x4xf32, #tpu.memory_space<vmem>>) attributes {dimension_semantics = [#tpu.dimension_semantics<parallel>, #tpu.dimension_semantics<arbitrary>], iteration_bounds = array<i64: 2, 1>, scalar_prefetch = 0 : i64, scratch_operands = 6 : i64, tpu.core_type = #tpu.core_type<tc>, window_params = [{transform_indices = @transform_0, window_bounds = array<i64: 2, 64, 4>}, {transform_indices = @transform_1, window_bounds = array<i64: 2, 64, 1>}, {transform_indices = @transform_2, window_bounds = array<i64: 2, 6, 4>}]} {
    %c0_i32 = arith.constant 0 : i32
    %0 = arith.cmpi eq, %arg1, %c0_i32 : i32
    %1 = arith.extui %0 : i1 to i32
    %c0_i32_0 = arith.constant 0 : i32
    %2 = arith.cmpi ne, %1, %c0_i32_0 : i32
    scf.if %2 {
      %cst_40 = arith.constant 0.000000e+00 : f32
      %46 = vector.broadcast %cst_40 : f32 to vector<2x1xf32>
      %c0_41 = arith.constant 0 : index
      %c0_42 = arith.constant 0 : index
      %47 = vector.load %arg5[%c0_41, %c0_42] : memref<2x1xf32, #tpu.memory_space<vmem>>, vector<2x1xf32>
      tpu.vector_store %arg5[%c0_41, %c0_42], %46 {strides = array<i32>} : memref<2x1xf32, #tpu.memory_space<vmem>>, vector<2x1xf32>,
      %cst_43 = arith.constant 0.000000e+00 : f32
      %48 = vector.broadcast %cst_43 : f32 to vector<2x4xf32>
      %c0_44 = arith.constant 0 : index
      %c0_45 = arith.constant 0 : index
      %49 = vector.load %arg6[%c0_44, %c0_45] : memref<2x4xf32, #tpu.memory_space<vmem>>, vector<2x4xf32>
      tpu.vector_store %arg6[%c0_44, %c0_45], %48 {strides = array<i32>} : memref<2x4xf32, #tpu.memory_space<vmem>>, vector<2x4xf32>,
      %cst_46 = arith.constant 0.000000e+00 : f32
      %50 = vector.broadcast %cst_46 : f32 to vector<2x4xf32>
      %c0_47 = arith.constant 0 : index
      %c0_48 = arith.constant 0 : index
      %51 = vector.load %arg7[%c0_47, %c0_48] : memref<2x4xf32, #tpu.memory_space<vmem>>, vector<2x4xf32>
      tpu.vector_store %arg7[%c0_47, %c0_48], %50 {strides = array<i32>} : memref<2x4xf32, #tpu.memory_space<vmem>>, vector<2x4xf32>,
      %cst_49 = arith.constant 0.000000e+00 : f32
      %52 = vector.broadcast %cst_49 : f32 to vector<2x4xf32>
      %c0_50 = arith.constant 0 : index
      %c0_51 = arith.constant 0 : index
      %53 = vector.load %arg8[%c0_50, %c0_51] : memref<2x4xf32, #tpu.memory_space<vmem>>, vector<2x4xf32>
      tpu.vector_store %arg8[%c0_50, %c0_51], %52 {strides = array<i32>} : memref<2x4xf32, #tpu.memory_space<vmem>>, vector<2x4xf32>,
      %cst_52 = arith.constant 0xFF800000 : f32
      %54 = vector.broadcast %cst_52 : f32 to vector<2x4xf32>
      %c0_53 = arith.constant 0 : index
      %c0_54 = arith.constant 0 : index
      %55 = vector.load %arg9[%c0_53, %c0_54] : memref<2x4xf32, #tpu.memory_space<vmem>>, vector<2x4xf32>
      tpu.vector_store %arg9[%c0_53, %c0_54], %54 {strides = array<i32>} : memref<2x4xf32, #tpu.memory_space<vmem>>, vector<2x4xf32>,
      %cst_55 = arith.constant 0x7F800000 : f32
      %56 = vector.broadcast %cst_55 : f32 to vector<2x4xf32>
      %c0_56 = arith.constant 0 : index
      %c0_57 = arith.constant 0 : index
      %57 = vector.load %arg10[%c0_56, %c0_57] : memref<2x4xf32, #tpu.memory_space<vmem>>, vector<2x4xf32>
      tpu.vector_store %arg10[%c0_56, %c0_57], %56 {strides = array<i32>} : memref<2x4xf32, #tpu.memory_space<vmem>>, vector<2x4xf32>,
    } else {
    }
    %c0 = arith.constant 0 : index
    %c0_1 = arith.constant 0 : index
    %c0_2 = arith.constant 0 : index
    %3 = vector.load %arg2[%c0, %c0_1, %c0_2] : memref<2x64x4xf32, #tpu.memory_space<vmem>>, vector<2x64x4xf32>
    %c0_3 = arith.constant 0 : index
    %c0_4 = arith.constant 0 : index
    %c0_5 = arith.constant 0 : index
    %4 = vector.load %arg3[%c0_3, %c0_4, %c0_5] : memref<2x64x1xf32, #tpu.memory_space<vmem>>, vector<2x64x1xf32>
    %cst = arith.constant 5.000000e-01 : f32
    %5 = vector.broadcast %cst : f32 to vector<2x64x1xf32>
    %6 = arith.cmpf ogt, %4, %5 : vector<2x64x1xf32>
    %7 = vector.broadcast %4 : vector<2x64x1xf32> to vector<2x64x4xf32>
    %8 = arith.mulf %3, %7 : vector<2x64x4xf32>
    %c0_6 = arith.constant 0 : index
    %c0_7 = arith.constant 0 : index
    %9 = vector.load %arg5[%c0_6, %c0_7] : memref<2x1xf32, #tpu.memory_space<vmem>>, vector<2x1xf32>
    %cst_8 = arith.constant dense<0.000000e+00> : vector<2x1xf32>
    %10 = vector.multi_reduction <add>, %4, %cst_8 [1] : vector<2x64x1xf32> to vector<2x1xf32>
    %11 = arith.addf %9, %10 : vector<2x1xf32>
    %c0_9 = arith.constant 0 : index
    %c0_10 = arith.constant 0 : index
    %12 = vector.load %arg5[%c0_9, %c0_10] : memref<2x1xf32, #tpu.memory_space<vmem>>, vector<2x1xf32>
    tpu.vector_store %arg5[%c0_9, %c0_10], %11 {strides = array<i32>} : memref<2x1xf32, #tpu.memory_space<vmem>>, vector<2x1xf32>,
    %c0_11 = arith.constant 0 : index
    %c0_12 = arith.constant 0 : index
    %13 = vector.load %arg6[%c0_11, %c0_12] : memref<2x4xf32, #tpu.memory_space<vmem>>, vector<2x4xf32>
    %cst_13 = arith.constant dense<0.000000e+00> : vector<2x4xf32>
    %14 = vector.multi_reduction <add>, %8, %cst_13 [1] : vector<2x64x4xf32> to vector<2x4xf32>
    %15 = arith.addf %13, %14 : vector<2x4xf32>
    %c0_14 = arith.constant 0 : index
    %c0_15 = arith.constant 0 : index
    %16 = vector.load %arg6[%c0_14, %c0_15] : memref<2x4xf32, #tpu.memory_space<vmem>>, vector<2x4xf32>
    tpu.vector_store %arg6[%c0_14, %c0_15], %15 {strides = array<i32>} : memref<2x4xf32, #tpu.memory_space<vmem>>, vector<2x4xf32>,
    %c0_16 = arith.constant 0 : index
    %c0_17 = arith.constant 0 : index
    %17 = vector.load %arg7[%c0_16, %c0_17] : memref<2x4xf32, #tpu.memory_space<vmem>>, vector<2x4xf32>
    %18 = arith.mulf %3, %8 : vector<2x64x4xf32>
    %cst_18 = arith.constant dense<0.000000e+00> : vector<2x4xf32>
    %19 = vector.multi_reduction <add>, %18, %cst_18 [1] : vector<2x64x4xf32> to vector<2x4xf32>
    %20 = arith.addf %17, %19 : vector<2x4xf32>
    %c0_19 = arith.constant 0 : index
    %c0_20 = arith.constant 0 : index
    %21 = vector.load %arg7[%c0_19, %c0_20] : memref<2x4xf32, #tpu.memory_space<vmem>>, vector<2x4xf32>
    tpu.vector_store %arg7[%c0_19, %c0_20], %20 {strides = array<i32>} : memref<2x4xf32, #tpu.memory_space<vmem>>, vector<2x4xf32>,
    %c0_21 = arith.constant 0 : index
    %c0_22 = arith.constant 0 : index
    %22 = vector.load %arg8[%c0_21, %c0_22] : memref<2x4xf32, #tpu.memory_space<vmem>>, vector<2x4xf32>
    %23 = math.absf %8 : vector<2x64x4xf32>
    %cst_23 = arith.constant dense<0.000000e+00> : vector<2x4xf32>
    %24 = vector.multi_reduction <add>, %23, %cst_23 [1] : vector<2x64x4xf32> to vector<2x4xf32>
    %25 = arith.addf %22, %24 : vector<2x4xf32>
    %c0_24 = arith.constant 0 : index
    %c0_25 = arith.constant 0 : index
    %26 = vector.load %arg8[%c0_24, %c0_25] : memref<2x4xf32, #tpu.memory_space<vmem>>, vector<2x4xf32>
    tpu.vector_store %arg8[%c0_24, %c0_25], %25 {strides = array<i32>} : memref<2x4xf32, #tpu.memory_space<vmem>>, vector<2x4xf32>,
    %c0_26 = arith.constant 0 : index
    %c0_27 = arith.constant 0 : index
    %27 = vector.load %arg9[%c0_26, %c0_27] : memref<2x4xf32, #tpu.memory_space<vmem>>, vector<2x4xf32>
    %cst_28 = arith.constant 0xFF800000 : f32
    %28 = vector.shape_cast %6 : vector<2x64x1xi1> to vector<2x64x1xi1>
    %29 = vector.broadcast %28 : vector<2x64x1xi1> to vector<2x64x4xi1>
    %30 = vector.broadcast %cst_28 : f32 to vector<2x64x4xf32>
    %31 = arith.select %29, %3, %30 : vector<2x64x4xi1>, vector<2x64x4xf32>
    %cst_29 = arith.constant dense<0xFF800000> : vector<2x4xf32>
    %32 = vector.multi_reduction <maximumf>, %31, %cst_29 [1] : vector<2x64x4xf32> to vector<2x4xf32>
    %33 = arith.maximumf %27, %32 : vector<2x4xf32>
    %c0_30 = arith.constant 0 : index
    %c0_31 = arith.constant 0 : index
    %34 = vector.load %arg9[%c0_30, %c0_31] : memref<2x4xf32, #tpu.memory_space<vmem>>, vector<2x4xf32>
    tpu.vector_store %arg9[%c0_30, %c0_31], %33 {strides = array<i32>} : memref<2x4xf32, #tpu.memory_space<vmem>>, vector<2x4xf32>,
    %c0_32 = arith.constant 0 : index
    %c0_33 = arith.constant 0 : index
    %35 = vector.load %arg10[%c0_32, %c0_33] : memref<2x4xf32, #tpu.memory_space<vmem>>, vector<2x4xf32>
    %cst_34 = arith.constant 0x7F800000 : f32
    %36 = vector.shape_cast %6 : vector<2x64x1xi1> to vector<2x64x1xi1>
    %37 = vector.broadcast %36 : vector<2x64x1xi1> to vector<2x64x4xi1>
    %38 = vector.broadcast %cst_34 : f32 to vector<2x64x4xf32>
    %39 = arith.select %37, %3, %38 : vector<2x64x4xi1>, vector<2x64x4xf32>
    %cst_35 = arith.constant dense<0x7F800000> : vector<2x4xf32>
    %40 = vector.multi_reduction <minimumf>, %39, %cst_35 [1] : vector<2x64x4xf32> to vector<2x4xf32>
    %41 = arith.minimumf %35, %40 : vector<2x4xf32>
    %c0_36 = arith.constant 0 : index
    %c0_37 = arith.constant 0 : index
    %42 = vector.load %arg10[%c0_36, %c0_37] : memref<2x4xf32, #tpu.memory_space<vmem>>, vector<2x4xf32>
    tpu.vector_store %arg10[%c0_36, %c0_37], %41 {strides = array<i32>} : memref<2x4xf32, #tpu.memory_space<vmem>>, vector<2x4xf32>,
    %c0_i32_38 = arith.constant 0 : i32
    %43 = arith.cmpi eq, %arg1, %c0_i32_38 : i32
    %44 = arith.extui %43 : i1 to i32
    %c0_i32_39 = arith.constant 0 : i32
    %45 = arith.cmpi ne, %44, %c0_i32_39 : i32
    scf.if %45 {
      %c0_40 = arith.constant 0 : index
      %c0_41 = arith.constant 0 : index
      %46 = vector.load %arg5[%c0_40, %c0_41] : memref<2x1xf32, #tpu.memory_space<vmem>>, vector<2x1xf32>
      %c0_42 = arith.constant 0 : index
      %c0_43 = arith.constant 0 : index
      %47 = vector.load %arg6[%c0_42, %c0_43] : memref<2x4xf32, #tpu.memory_space<vmem>>, vector<2x4xf32>
      %48 = vector.broadcast %46 : vector<2x1xf32> to vector<2x4xf32>
      %49 = arith.divf %47, %48 : vector<2x4xf32>
      %c0_44 = arith.constant 0 : index
      %c0_45 = arith.constant 0 : index
      %50 = vector.load %arg7[%c0_44, %c0_45] : memref<2x4xf32, #tpu.memory_space<vmem>>, vector<2x4xf32>
      %51 = arith.mulf %47, %47 : vector<2x4xf32>
      %52 = vector.broadcast %46 : vector<2x1xf32> to vector<2x4xf32>
      %53 = arith.divf %51, %52 : vector<2x4xf32>
      %54 = arith.subf %50, %53 : vector<2x4xf32>
      %cst_46 = arith.constant 1.000000e+00 : f32
      %55 = vector.broadcast %cst_46 : f32 to vector<2x1xf32>
      %56 = arith.subf %46, %55 : vector<2x1xf32>
      %57 = vector.broadcast %56 : vector<2x1xf32> to vector<2x4xf32>
      %58 = arith.divf %54, %57 : vector<2x4xf32>
      %59 = vector.shape_cast %49 : vector<2x4xf32> to vector<2x1x4xf32>
      %c0_47 = arith.constant 0 : index
      %c0_48 = arith.constant 0 : index
      %c0_49 = arith.constant 0 : index
      %60 = vector.load %arg4[%c0_47, %c0_48, %c0_49] : memref<2x6x4xf32, #tpu.memory_space<vmem>>, vector<2x1x4xf32>
      tpu.vector_store %arg4[%c0_47, %c0_48, %c0_49], %59 {strides = array<i32>} : memref<2x6x4xf32, #tpu.memory_space<vmem>>, vector<2x1x4xf32>,
      %61 = vector.shape_cast %49 : vector<2x4xf32> to vector<2x1x4xf32>
      %c0_50 = arith.constant 0 : index
      %c1 = arith.constant 1 : index
      %c0_51 = arith.constant 0 : index
      %62 = vector.load %arg4[%c0_50, %c1, %c0_51] : memref<2x6x4xf32, #tpu.memory_space<vmem>>, vector<2x1x4xf32>
      tpu.vector_store %arg4[%c0_50, %c1, %c0_51], %61 {strides = array<i32>} : memref<2x6x4xf32, #tpu.memory_space<vmem>>, vector<2x1x4xf32>,
      %63 = vector.shape_cast %58 : vector<2x4xf32> to vector<2x1x4xf32>
      %c0_52 = arith.constant 0 : index
      %c2 = arith.constant 2 : index
      %c0_53 = arith.constant 0 : index
      %64 = vector.load %arg4[%c0_52, %c2, %c0_53] : memref<2x6x4xf32, #tpu.memory_space<vmem>>, vector<2x1x4xf32>
      tpu.vector_store %arg4[%c0_52, %c2, %c0_53], %63 {strides = array<i32>} : memref<2x6x4xf32, #tpu.memory_space<vmem>>, vector<2x1x4xf32>,
      %c0_54 = arith.constant 0 : index
      %c0_55 = arith.constant 0 : index
      %65 = vector.load %arg9[%c0_54, %c0_55] : memref<2x4xf32, #tpu.memory_space<vmem>>, vector<2x4xf32>
      %66 = vector.shape_cast %65 : vector<2x4xf32> to vector<2x1x4xf32>
      %c0_56 = arith.constant 0 : index
      %c3 = arith.constant 3 : index
      %c0_57 = arith.constant 0 : index
      %67 = vector.load %arg4[%c0_56, %c3, %c0_57] : memref<2x6x4xf32, #tpu.memory_space<vmem>>, vector<2x1x4xf32>
      tpu.vector_store %arg4[%c0_56, %c3, %c0_57], %66 {strides = array<i32>} : memref<2x6x4xf32, #tpu.memory_space<vmem>>, vector<2x1x4xf32>,
      %c0_58 = arith.constant 0 : index
      %c0_59 = arith.constant 0 : index
      %68 = vector.load %arg10[%c0_58, %c0_59] : memref<2x4xf32, #tpu.memory_space<vmem>>, vector<2x4xf32>
      %69 = vector.shape_cast %68 : vector<2x4xf32> to vector<2x1x4xf32>
      %c0_60 = arith.constant 0 : index
      %c4 = arith.constant 4 : index
      %c0_61 = arith.constant 0 : index
      %70 = vector.load %arg4[%c0_60, %c4, %c0_61] : memref<2x6x4xf32, #tpu.memory_space<vmem>>, vector<2x1x4xf32>
      tpu.vector_store %arg4[%c0_60, %c4, %c0_61], %69 {strides = array<i32>} : memref<2x6x4xf32, #tpu.memory_space<vmem>>, vector<2x1x4xf32>,
      %c0_62 = arith.constant 0 : index
      %c0_63 = arith.constant 0 : index
      %71 = vector.load %arg8[%c0_62, %c0_63] : memref<2x4xf32, #tpu.memory_space<vmem>>, vector<2x4xf32>
      %72 = vector.shape_cast %71 : vector<2x4xf32> to vector<2x1x4xf32>
      %c0_64 = arith.constant 0 : index
      %c5 = arith.constant 5 : index
      %c0_65 = arith.constant 0 : index
      %73 = vector.load %arg4[%c0_64, %c5, %c0_65] : memref<2x6x4xf32, #tpu.memory_space<vmem>>, vector<2x1x4xf32>
      tpu.vector_store %arg4[%c0_64, %c5, %c0_65], %72 {strides = array<i32>} : memref<2x6x4xf32, #tpu.memory_space<vmem>>, vector<2x1x4xf32>,
    } else {
    }
    return
  }
  func.func @transform_0(%arg0: i32, %arg1: i32) -> (i32, i32, i32) {
    %c0_i32 = arith.constant 0 : i32
    %c0_i32_0 = arith.constant 0 : i32
    return %arg0, %arg1, %c0_i32 : i32, i32, i32
  }
  func.func @transform_1(%arg0: i32, %arg1: i32) -> (i32, i32, i32) {
    %c0_i32 = arith.constant 0 : i32
    %c0_i32_0 = arith.constant 0 : i32
    return %arg0, %arg1, %c0_i32 : i32, i32, i32
  }
  func.func @transform_2(%arg0: i32, %arg1: i32) -> (i32, i32, i32) {
    %c0_i32 = arith.constant 0 : i32
    %c0_i32_0 = arith.constant 0 : i32
    %c0_i32_1 = arith.constant 0 : i32
    return %arg0, %c0_i32, %c0_i32_0 : i32, i32, i32
  }
}

</mosaic_0001>

<bundles_post_ra>
// kernel: tpu_custom_call.1
= control target key start
LH: loop header
LB: loop body
LE: loop exit
PB: predicated region body
PF: predicated region fallthrough
CT: control target
= control target key end

     0   :  { %s1084_s9 = smov 0   ;;  %s1086_s10 = smov 0   ;;  %s1629_s0 = inlined_call_operand.vmem [shape: f32[4,64,4], index: 0, kind: input, shape index: {}]   ;;  %s1630_s1 = inlined_call_operand.vmem [shape: f32[4,64,1], index: 1, kind: input, shape index: {}]   ;;  %s1631_s2 = inlined_call_operand.vmem [shape: f32[4,6,4], index: 2, kind: output, shape index: {}]  }
   0x1   :  { %s1088_s11 = smov 0  }
   0x2 LB: > { %s24_s12 = sadd.s32 1, %s1059_s10  ;;  %p992_p0 = scmp.ge.s32.totalorder %s1063_s11, 1  ;;  %s1063_s11 = sphi %s1088_s11, %s12_s11   ;;  %s1059_s10 = sphi %s1086_s10, %s1635_s10   ;;  %s1055_s9 = sphi %s1084_s9, %s1634_s9  }
   0x3   : > { %p26_p1 = scmp.ge.s32.totalorder %s24_s12, 2  ;;  %p152_p2 = scmp.lt.s32.totalorder %s1063_s11, 3 }
   0x5   : > { %s1637_s12 = smov (%p26_p1, %s24_s12), 0  ;;  %p153_p3 = pnand %p992_p0, %p152_p2 }
   0x6   : > { %s993_s13 = sshll.u32 (!%p153_p3), %s1055_s9, 1 }
   0x7   : > { %156 = sbr.rel (%p153_p3) target bundleno = 246 (0xf6), region = 28  ;;  %p191_p4 = scmp.lt.s32.totalorder (!%p153_p3), %s993_s13, 3 }
   0xc   : > { %v1065_v0 = vmov 0   ;;  %s1639_s13 = smov (!%p191_p4, %s993_s13), 3  ;;  %vm376_vm0 = vcmask 7168   ;;  %vm223_vm1 = vcmask 1024   ;;  %v1066_v34 = vmov 0.0  }
   0xd   : > { %1036 = vset.pattern.permute.xlu2 %v1065_v0  ;;  %1035 = vset.pattern.permute.xlu1 %v1065_v0  ;;  %s1004_s14 = sshll.u32 %s1639_s13, 6  ;;  %224 = vst.msk [vmem:[#allocation2] sm:$0x3] %vm223_vm1, %v1066_v34  ;;  %vm421_vm2 = vcmask 1041409   ;;  %s1000_s21 = sshll.u32 %s1639_s13, 3 }
   0xe   : > { %1034 = vset.pattern.permute.xlu0 %v1065_v0  ;;  %s1113_s17 = scalar_lea.vmem %s1630_s1, %s1004_s14  ;;  %s1247_s20 = scalar_lea.vmem %s1629_s0, %s1004_s14 }
   0xf   : > { %v1116_v1 = vld [vmem:[%s1113_s17 + $0x20] sm:$0xff]  ;;  %v1119_v2 = vld [vmem:[%s1113_s17 + $0x10] sm:$0xff]  ;;  %v1129_v5 = vld [vmem:[%s1113_s17 + $0x8] sm:$0xff]  ;;  %s1557_s24 = scalar_lea.vmem %s1631_s2, %s1000_s21 }
  0x10   : > { %v1122_v3 = vld [vmem:[%s1113_s17] sm:$0xff]  ;;  %301 = vperm.xlu2 %1036, %v1116_v1   ;;  %291 = vperm.xlu1 %1035, %v1119_v2   ;;  %v380_v6 = vsel %vm376_vm0, %v1119_v2, 0.0  ;;  %v378_v7 = vsel %vm376_vm0, %v1129_v5, 0.0  ;;  %v1140_v9 = vld [vmem:[%s1113_s17 + $0x18] sm:$0xff]  ;;  %v1145_v12 = vld [vmem:[%s1113_s17 + $0x50] sm:$0xff]  ;;  %v384_v20 = vsel %vm376_vm0, %v1116_v1, 0.0 }
  0x11   : > { %v377_v4 = vsel %vm376_vm0, %v1122_v3, 0.0  ;;  %281 = vperm.xlu0 %1034, %v1122_v3   ;;  %v1137_v8 = vld [vmem:[%s1113_s17 + $0x40] sm:$0xff]  ;;  %v1148_v13 = vld [vmem:[%s1113_s17 + $0x48] sm:$0xff]  ;;  %v382_v14 = vsel %vm376_vm0, %v1140_v9, 0.0  ;;  %v401_v15 = vsel %vm376_vm0, %v1145_v12, 0.0  ;;  %v1157_v18 = vld [vmem:[%s1113_s17 + $0x58] sm:$0xff] }
  0x12   : > { %v379_v10 = vadd.f32 %v378_v7, %v377_v4  ;;  %v398_v11 = vsel %vm376_vm0, %v1137_v8, 0.0  ;;  %v399_v16 = vsel %vm376_vm0, %v1148_v13, 0.0  ;;  %v1162_v21 = vld [vmem:[%s1113_s17 + $0x28] sm:$0xff]  ;;  %v403_v22 = vsel %vm376_vm0, %v1157_v18, 0.0  ;;  %v1167_v25 = vld [vmem:[%s1113_s17 + $0x60] sm:$0xff]  ;;  %v1176_v28 = vld [vmem:[%s1113_s17 + $0x30] sm:$0xff] }
  0x13   : > { %v400_v19 = vadd.f32 %v399_v16, %v398_v11  ;;  %v386_v26 = vsel %vm376_vm0, %v1162_v21, 0.0  ;;  %v405_v27 = vsel %vm376_vm0, %v1167_v25, 0.0  ;;  %v1179_v30 = vld [vmem:[%s1113_s17 + $0x68] sm:$0xff]  ;;  %v388_v32 = vsel %vm376_vm0, %v1176_v28, 0.0  ;;  %v1189_v35 = vld [vmem:[%s1113_s17 + $0x38] sm:$0xff]  ;;  %v261_v37 = vld [vmem:[%s1113_s17 + $0x70] sm:$0xff] }
  0x14   : > { %v381_v17 = vadd.f32 %v380_v6, %v379_v10  ;;  %v407_v33 = vsel %vm376_vm0, %v1179_v30, 0.0  ;;  %v390_v39 = vsel %vm376_vm0, %v1189_v35, 0.0  ;;  %v409_v40 = vsel %vm376_vm0, %v261_v37, 0.0  ;;  %v1196_v43 = vld [vmem:[%s1113_s17 + $0x78] sm:$0xff]  ;;  %v375_v59 = vld [vmem:[#allocation2] sm:$0x3] }
  0x15   : > { %v402_v24 = vadd.f32 %v401_v15, %v400_v19  ;;  %v411_v44 = vsel %vm376_vm0, %v1196_v43, 0.0  ;;  %vm264_vm3 = vcmp.gt.f32.partialorder %v1129_v5, 0.5  ;;  %vm263_vm4 = vcmp.gt.f32.partialorder %v1122_v3, 0.5 }
  0x16   : > { %v383_v23 = vadd.f32 %v382_v14, %v381_v17  ;;  %v610_v63 = vsel %vm264_vm3, 1, %v1065_v0  ;;  %v609_v4 = vsel %vm263_vm4, 1, %v1065_v0  ;;  %vm277_vm5 = vcmp.gt.f32.partialorder %v261_v37, 0.5 }
  0x17   : > { %v404_v31 = vadd.f32 %v403_v22, %v402_v24  ;;  %vm267_vm6 = vcmp.gt.f32.partialorder %v1116_v1, 0.5  ;;  %vm266_vm7 = vcmp.gt.f32.partialorder %v1140_v9, 0.5  ;;  %v623_v6 = vsel %vm277_vm5, 1, %v1065_v0  ;;  %v1255_v24 = vld [vmem:[%s1247_s20] sm:$0xff] }
  0x18   : > { %306 = vperm.xlu2 %1036, %v1162_v21   ;;  %296 = vperm.xlu1 %1035, %v1140_v9   ;;  %v385_v29 = vadd.f32 %v384_v20, %v383_v23  ;;  %vm265_vm8 = vcmp.gt.f32.partialorder %v1119_v2, 0.5  ;;  %v612_v3 = vsel %vm266_vm7, 1, %v1065_v0  ;;  %vm272_vm9 = vcmp.gt.f32.partialorder %v1148_v13, 0.5 }
  0x19   : > { %286 = vperm.xlu0 %1034, %v1129_v5   ;;  %v406_v38 = vadd.f32 %v405_v27, %v404_v31  ;;  %v613_v5 = vsel %vm267_vm6, 1, %v1065_v0  ;;  %v611_v7 = vsel %vm265_vm8, 1, %v1065_v0  ;;  %vm271_vm10 = vcmp.gt.f32.partialorder %v1137_v8, 0.5  ;;  %v1262_v27 = vld [vmem:[%s1247_s20 + $0x10] sm:$0xff] }
  0x1a   : > { %v387_v36 = vadd.f32 %v386_v26, %v385_v29  ;;  %vm268_vm11 = vcmp.gt.f32.partialorder %v1162_v21, 0.5  ;;  %v618_v1 = vsel %vm272_vm9, 1, %v1065_v0  ;;  %v617_v9 = vsel %vm271_vm10, 1, %v1065_v0  ;;  %v1259_v26 = vld [vmem:[%s1247_s20 + $0x28] sm:$0xff] }
  0x1b   : > { %v408_v42 = vadd.f32 %v407_v33, %v406_v38  ;;  %v614_v2 = vsel %vm268_vm11, 1, %v1065_v0  ;;  %vm275_vm12 = vcmp.gt.f32.partialorder %v1167_v25, 0.5  ;;  %vm274_vm13 = vcmp.gt.f32.partialorder %v1157_v18, 0.5  ;;  %v1274_v33 = vld [vmem:[%s1247_s20 + $0x8] sm:$0xff] }
  0x1c   : > { %v389_v41 = vadd.f32 %v388_v32, %v387_v36  ;;  %vm273_vm14 = vcmp.gt.f32.partialorder %v1145_v12, 0.5  ;;  %v621_v10 = vsel %vm275_vm12, 1, %v1065_v0  ;;  %vm270_vm15 = vcmp.gt.f32.partialorder %v1189_v35, 0.5  ;;  %v1271_v32 = vld [vmem:[%s1247_s20 + $0x18] sm:$0xff] }
  0x1d   : > { %v410_v46 = vadd.f32 %v409_v40, %v408_v42  ;;  %v619_v11 = vsel %vm273_vm14, 1, %v1065_v0  ;;  %vm269_vm0 = vcmp.gt.f32.partialorder %v1176_v28, 0.5  ;;  %vm278_vm3 = vcmp.gt.f32.partialorder %v1196_v43, 0.5 }
  0x1e   : > { %v391_v45 = vadd.f32 %v390_v39, %v389_v41  ;;  %v615_v14 = vsel %vm269_vm0, 1, %v1065_v0  ;;  %v624_v16 = vsel %vm278_vm3, 1, %v1065_v0  ;;  %vm428_vm4 = vcmask 31744  }
  0x1f   : > { %v412_v48 = vadd.f32 %v411_v44, %v410_v46  ;;  %vm225_vm5 = vcmask 25600  }
  0x20   : > { %321 = vperm.xlu2 %1036, %v1137_v8   ;;  %316 = vperm.xlu1 %1035, %v1189_v35   ;;  %v392_v47 = vrot.slane %v391_v45, 4  ;;  %v620_v8 = vsel %vm274_vm13, 1, %v1065_v0  ;;  %226 = vst.msk [vmem:[#allocation3] sm:$0x3] %vm225_vm5, %v1066_v34 }
  0x21   : > { %311 = vperm.xlu0 %1034, %v1176_v28   ;;  %v413_v50 = vrot.slane %v412_v48, 4  ;;  %227 = vst.msk [vmem:[#allocation4] sm:$0x3] %vm225_vm5, %v1066_v34 }
  0x22   : > { %v393_v49 = vadd.f32 %v392_v47, %v391_v45  ;;  %228 = vst.msk [vmem:[#allocation5] sm:$0x3] %vm225_vm5, %v1066_v34 }
  0x23   : > { %v414_v52 = vadd.f32 %v413_v50, %v412_v48 }
  0x24   : > { %v394_v51 = vrot.slane %v393_v49, 2 }
  0x25   : > { %v415_v54 = vrot.slane %v414_v52, 2 }
  0x26   : > { %v395_v53 = vadd.f32 %v394_v51, %v393_v49 }
  0x27   : > { %v416_v56 = vadd.f32 %v415_v54, %v414_v52 }
  0x28   : > { %v396_v55 = vrot.slane %v395_v53, 1  ;;  %336 = vperm.xlu2 %1036, %v1157_v18   ;;  %331 = vperm.xlu1 %1035, %v1145_v12  }
  0x29   : > { %326 = vperm.xlu0 %1034, %v1148_v13   ;;  %v417_v58 = vrot.slane %v416_v56, 1  ;;  %v616_v13 = vsel %vm270_vm15, 1, %v1065_v0 }
  0x2a   : > { %v397_v57 = vadd.f32 %v396_v55, %v395_v53  ;;  %v1292_v55 = vld [vmem:[%s1247_s20 + $0x40] sm:$0xff] }
  0x2b   : > { %v418_v60 = vadd.f32 %v417_v58, %v416_v56 }
  0x2d   : > { %v422_v61 = vsel %vm421_vm2, %v418_v60, %v397_v57 }
  0x2e   : > { %v424_v62 = vadd.f32 %v422_v61, %v375_v59  ;;  %v1298_v59 = vld [vmem:[%s1247_s20 + $0x38] sm:$0xff] }
  0x30   : > { %351 = vperm.xlu2 %1036, %v261_v37   ;;  %346 = vperm.xlu1 %1035, %v1179_v30   ;;  %426 = vst.msk [vmem:[#allocation2] sm:$0x3] %vm223_vm1, %v424_v62  ;;  %vm276_vm1 = vcmp.gt.f32.partialorder %v1179_v30, 0.5 }
  0x31   : > { %341 = vperm.xlu0 %1034, %v1167_v25   ;;  %v622_v12 = vsel %vm276_vm1, 1, %v1065_v0  ;;  %v1250_v0 = vld [vmem:[%s1247_s20 + $0x20] sm:$0xff]  ;;  %vm871_vm1 = vcmask 24576  }
  0x37   : > { %v821_v15 = vld [vmem:[#allocation2] sm:$0x3] }
  0x38   : > { %629 = vperm.xlu2 %1036, %v610_v63   ;;  %626 = vperm.xlu1 %1035, %v609_v4   ;;  %v1001_v17 = vadd.f32 -1.0, %v821_v15  ;;  %v1302_v4 = vld [vmem:[%s1247_s20 + $0x30] sm:$0xff] }
  0x39   : > { %356 = vperm.xlu0 %1034, %v1196_v43  }
  0x40   : > { %638 = vperm.xlu2 %1036, %v613_v5   ;;  %635 = vperm.xlu1 %1035, %v612_v3  }
  0x41   : > { %632 = vperm.xlu0 %1034, %v611_v7  }
  0x48   : > { %653 = vperm.xlu2 %1036, %v618_v1   ;;  %650 = vperm.xlu1 %1035, %v617_v9  }
  0x49   : > { %641 = vperm.xlu0 %1034, %v614_v2  }
  0x50   : > { %662 = vperm.xlu2 %1036, %v621_v10   ;;  %659 = vperm.xlu1 %1035, %v620_v8   ;;  %v1315_v10 = vld [vmem:[%s1247_s20 + $0x58] sm:$0xff] }
  0x51   : > { %656 = vperm.xlu0 %1034, %v619_v11  }
  0x58   : > { %647 = vperm.xlu2 %1036, %v616_v13   ;;  %644 = vperm.xlu1 %1035, %v615_v14  }
  0x59   : > { %665 = vperm.xlu0 %1034, %v622_v12  }
  0x60   : > { %825 = vperm.xlu2 %1036, %v821_v15   ;;  %671 = vperm.xlu1 %1035, %v624_v16  }
  0x61   : > { %668 = vperm.xlu0 %1034, %v623_v6  }
  0x69   : > { %850 = vperm.xlu0 %1034, %v1001_v17  }
  0x6a   : > { %v302_v18 = vpop.permute.xlu2 %301 }
  0x6b   : > { %v363_v25 = vmul.f32 %v302_v18, %v1250_v0 }
  0x6d   : > { %v483_v29 = vmul.f32 %v363_v25, %v1250_v0  ;;  %v436_v39 = vsel %vm428_vm4, %v363_v25, 0.0  ;;  %v548_v44 = vand.u32 2147483647, %v363_v25 }
  0x6f   : > { %v502_v43 = vsel %vm428_vm4, %v483_v29, 0.0  ;;  %v567_v12 = vsel %vm428_vm4, %v548_v44, 0.0  ;;  %v1335_v44 = vld [vmem:[%s1247_s20 + $0x70] sm:$0xff] }
  0x72   : > { %v307_v19 = vpop.permute.xlu2 %306 }
  0x73   : > { %v1267_v30 = vmul.f32 %v307_v19, %v1259_v26 }
  0x75   : > { %v484_v45 = vmul.f32 %v1267_v30, %v1259_v26  ;;  %v549_v6 = vand.u32 2147483647, %v1267_v30  ;;  %v438_v18 = vsel %vm428_vm4, %v1267_v30, 0.0 }
  0x77   : > { %v569_v29 = vsel %vm428_vm4, %v549_v6, 0.0 }
  0x7a   : > { %v322_v20 = vpop.permute.xlu2 %321 }
  0x7b   : > { %v367_v2 = vmul.f32 %v322_v20, %v1292_v55 }
  0x82   : > { %v1252_v21 = vpop.permute.xlu2 %336  ;;  %v292_v22 = vpop.permute.xlu1 %291 }
  0x83   : > { %v282_v23 = vpop.permute.xlu0 %281  ;;  %v361_v31 = vmul.f32 %v292_v22, %v1262_v27  ;;  %v370_v34 = vmul.f32 %v1252_v21, %v1315_v10 }
  0x84   : > { %v359_v28 = vmul.f32 %v282_v23, %v1255_v24  ;;  %v504_v23 = vsel %vm428_vm4, %v484_v45, 0.0 }
  0x85   : > { %v432_v46 = vsel %vm428_vm4, %v361_v31, 0.0  ;;  %v481_v47 = vmul.f32 %v361_v31, %v1262_v27  ;;  %v546_v51 = vand.u32 2147483647, %v361_v31  ;;  %v450_v31 = vsel %vm428_vm4, %v367_v2, 0.0 }
  0x86   : > { %v479_v37 = vmul.f32 %v359_v28, %v1255_v24  ;;  %v544_v40 = vand.u32 2147483647, %v359_v28  ;;  %v429_v48 = vsel %vm428_vm4, %v359_v28, 0.0 }
  0x87   : > { %v498_v5 = vsel %vm428_vm4, %v481_v47, 0.0  ;;  %v563_v8 = vsel %vm428_vm4, %v546_v51, 0.0 }
  0x88   : > { %v495_v52 = vsel %vm428_vm4, %v479_v37, 0.0  ;;  %v560_v56 = vsel %vm428_vm4, %v544_v40, 0.0 }
  0x8a   : > { %v1276_v35 = vpop.permute.xlu2 %351  ;;  %v297_v36 = vpop.permute.xlu1 %296 }
  0x8b   : > { %v287_v38 = vpop.permute.xlu0 %286  ;;  %v362_v41 = vmul.f32 %v297_v36, %v1271_v32  ;;  %v487_v36 = vmul.f32 %v367_v2, %v1292_v55 }
  0x8c   : > { %v360_v42 = vmul.f32 %v287_v38, %v1274_v33 }
  0x8d   : > { %v482_v57 = vmul.f32 %v362_v41, %v1271_v32  ;;  %v547_v60 = vand.u32 2147483647, %v362_v41  ;;  %v434_v3 = vsel %vm428_vm4, %v362_v41, 0.0  ;;  %v516_v6 = vsel %vm428_vm4, %v487_v36, 0.0 }
  0x8e   : > { %v430_v49 = vsel %vm428_vm4, %v360_v42, 0.0  ;;  %v480_v50 = vmul.f32 %v360_v42, %v1274_v33  ;;  %v545_v54 = vand.u32 2147483647, %v360_v42  ;;  %v552_v42 = vand.u32 2147483647, %v367_v2 }
  0x8f   : > { %v431_v53 = vadd.f32 %v430_v49, %v429_v48  ;;  %v500_v15 = vsel %vm428_vm4, %v482_v57, 0.0  ;;  %v565_v19 = vsel %vm428_vm4, %v547_v60, 0.0  ;;  %v373_v57 = vmul.f32 %v1276_v35, %v1335_v44 }
  0x90   : > { %v496_v58 = vsel %vm428_vm4, %v480_v50, 0.0  ;;  %v561_v63 = vsel %vm428_vm4, %v545_v54, 0.0 }
  0x91   : > { %v433_v61 = vadd.f32 %v432_v46, %v431_v53  ;;  %v497_v62 = vadd.f32 %v496_v58, %v495_v52  ;;  %v562_v7 = vadd.f32 %v561_v63, %v560_v56  ;;  %v490_v46 = vmul.f32 %v370_v34, %v1315_v10  ;;  %v1351_v63 = vld [vmem:[%s1247_s20 + $0x48] sm:$0xff] }
  0x92   : > { %v317_v1 = vpop.permute.xlu1 %316  ;;  %v1309_v9 = vpop.permute.xlu2 %629 }
  0x93   : > { %v435_v11 = vadd.f32 %v434_v3, %v433_v61  ;;  %v499_v13 = vadd.f32 %v498_v5, %v497_v62  ;;  %v312_v14 = vpop.permute.xlu0 %311  ;;  %v564_v16 = vadd.f32 %v563_v8, %v562_v7  ;;  %v366_v22 = vmul.f32 %v317_v1, %v1298_v59  ;;  %v1348_v62 = vld [vmem:[%s1247_s20 + $0x50] sm:$0xff] }
  0x94   : > { %v365_v17 = vmul.f32 %v312_v14, %v1302_v4  ;;  %v581_v5 = vsel %vm428_vm4, %v552_v42, 0.0  ;;  %v455_v1 = vsel %vm428_vm4, %v370_v34, 0.0  ;;  %vm674_vm6 = vcmp.eq.s32.totalorder %v1309_v9, 1 }
  0x95   : > { %v501_v20 = vadd.f32 %v500_v15, %v499_v13  ;;  %v566_v25 = vadd.f32 %v565_v19, %v564_v16  ;;  %v437_v28 = vadd.f32 %v436_v39, %v435_v11  ;;  %v486_v45 = vmul.f32 %v366_v22, %v1298_v59 }
  0x96   : > { %v485_v30 = vmul.f32 %v365_v17, %v1302_v4  ;;  %v550_v40 = vand.u32 2147483647, %v365_v17  ;;  %v551_v21 = vand.u32 2147483647, %v366_v22  ;;  %v440_v39 = vsel %vm428_vm4, %v365_v17, 0.0 }
  0x97   : > { %v439_v37 = vadd.f32 %v438_v18, %v437_v28  ;;  %v503_v38 = vadd.f32 %v502_v43, %v501_v20  ;;  %v568_v41 = vadd.f32 %v567_v12, %v566_v25  ;;  %v555_v43 = vand.u32 2147483647, %v370_v34 }
  0x98   : > { %v442_v52 = vsel %vm428_vm4, %v366_v22, 0.0  ;;  %v506_v53 = vsel %vm428_vm4, %v485_v30, 0.0  ;;  %v571_v54 = vsel %vm428_vm4, %v550_v40, 0.0  ;;  %v508_v3 = vsel %vm428_vm4, %v486_v45, 0.0 }
  0x99   : > { %v441_v47 = vadd.f32 %v440_v39, %v439_v37  ;;  %v505_v48 = vadd.f32 %v504_v23, %v503_v38  ;;  %v570_v49 = vadd.f32 %v569_v29, %v568_v41  ;;  %v573_v7 = vsel %vm428_vm4, %v551_v21, 0.0  ;;  %v1375_v41 = vld [vmem:[%s1247_s20 + $0x68] sm:$0xff] }
  0x9a   : > { %v332_v50 = vpop.permute.xlu1 %331  ;;  %v1340_v51 = vpop.permute.xlu2 %638  ;;  %v521_v11 = vsel %vm428_vm4, %v490_v46, 0.0  ;;  %v586_v13 = vsel %vm428_vm4, %v555_v43, 0.0  ;;  %v1363_v15 = vsel %vm428_vm4, %v373_v57, 0.0  ;;  %v493_v23 = vmul.f32 %v373_v57, %v1335_v44 }
  0x9b   : > { %v327_v56 = vpop.permute.xlu0 %326  ;;  %v443_v58 = vadd.f32 %v442_v52, %v441_v47  ;;  %v507_v60 = vadd.f32 %v506_v53, %v505_v48  ;;  %v572_v61 = vadd.f32 %v571_v54, %v570_v49  ;;  %v369_v14 = vmul.f32 %v332_v50, %v1348_v62  ;;  %v1388_v53 = vld [vmem:[%s1247_s20 + $0x60] sm:$0xff] }
  0x9c   : > { %v368_v12 = vmul.f32 %v327_v56, %v1351_v63  ;;  %v558_v34 = vand.u32 2147483647, %v373_v57  ;;  %v690_v45 = vsel %vm674_vm6, %v1274_v33, -inf  ;;  %vm677_vm7 = vcmp.eq.s32.totalorder %v1340_v51, 1 }
  0x9d   : > { %v444_v2 = vrot.slane %v443_v58, 4  ;;  %v509_v8 = vadd.f32 %v508_v3, %v507_v60  ;;  %v574_v35 = vadd.f32 %v573_v7, %v572_v61  ;;  %v489_v30 = vmul.f32 %v369_v14, %v1348_v62  ;;  %v1405_v7 = vld [vmem:[%s1247_s20 + $0x78] sm:$0xff] }
  0x9e   : > { %v451_v19 = vsel %vm428_vm4, %v368_v12, 0.0  ;;  %v488_v20 = vmul.f32 %v368_v12, %v1351_v63  ;;  %v553_v22 = vand.u32 2147483647, %v368_v12  ;;  %v554_v37 = vand.u32 2147483647, %v369_v14 }
  0x9f   : > { %v445_v16 = vadd.f32 %v444_v2, %v443_v58  ;;  %v510_v17 = vrot.slane %v509_v8, 4  ;;  %v575_v18 = vrot.slane %v574_v35, 4  ;;  %v452_v28 = vadd.f32 %v451_v19, %v450_v31 }
  0xa0   : > { %v517_v38 = vsel %vm428_vm4, %v488_v20, 0.0  ;;  %v582_v40 = vsel %vm428_vm4, %v553_v22, 0.0  ;;  %v755_v31 = vsel %vm674_vm6, %v1274_v33, inf  ;;  %v453_v21 = vsel %vm428_vm4, %v369_v14, 0.0 }
  0xa1   : > { %v446_v25 = vrot.slane %v445_v16, 2  ;;  %v511_v39 = vadd.f32 %v510_v17, %v509_v8  ;;  %v576_v46 = vadd.f32 %v575_v18, %v574_v35  ;;  %v518_v47 = vadd.f32 %v517_v38, %v516_v6 }
  0xa2   : > { %v347_v29 = vpop.permute.xlu1 %346  ;;  %v1369_v36 = vpop.permute.xlu2 %653  ;;  %v583_v48 = vadd.f32 %v582_v40, %v581_v5  ;;  %v527_v49 = vsel %vm428_vm4, %v493_v23, 0.0  ;;  %v454_v43 = vadd.f32 %v453_v21, %v452_v28  ;;  %v592_v9 = vsel %vm428_vm4, %v558_v34, 0.0 }
  0xa3   : > { %v342_v42 = vpop.permute.xlu0 %341  ;;  %v447_v50 = vadd.f32 %v446_v25, %v445_v16  ;;  %v372_v52 = vmul.f32 %v347_v29, %v1375_v41  ;;  %v1392_v33 = vsel %vm428_vm4, %v690_v45, -inf  ;;  %v519_v54 = vsel %vm428_vm4, %v489_v30, 0.0 }
  0xa4   : > { %v584_v56 = vsel %vm428_vm4, %v554_v37, 0.0  ;;  %v1397_v57 = vsel %vm428_vm4, %v755_v31, inf  ;;  %v693_v58 = vsel %vm677_vm7, %v1250_v0, -inf  ;;  %v520_v60 = vadd.f32 %v519_v54, %v518_v47 }
  0xa5   : > { %v585_v61 = vadd.f32 %v584_v56, %v583_v48  ;;  %v512_v6 = vrot.slane %v511_v39, 2  ;;  %v577_v5 = vrot.slane %v576_v46, 2  ;;  %vm682_vm8 = vcmp.eq.s32.totalorder %v1369_v36, 1 }
  0xa6   : > { %v371_v3 = vmul.f32 %v342_v42, %v1388_v53  ;;  %v448_v2 = vrot.slane %v447_v50, 1  ;;  %v459_v8 = vsel %vm428_vm4, %v372_v52, 0.0  ;;  %v492_v35 = vmul.f32 %v372_v52, %v1375_v41 }
  0xa7   : > { %v456_v14 = vadd.f32 %v455_v1, %v454_v43  ;;  %v557_v17 = vand.u32 2147483647, %v372_v52  ;;  %v522_v34 = vadd.f32 %v521_v11, %v520_v60  ;;  %v587_v25 = vadd.f32 %v586_v13, %v585_v61 }
  0xa8   : > { %v457_v18 = vsel %vm428_vm4, %v371_v3, 0.0  ;;  %v491_v19 = vmul.f32 %v371_v3, %v1388_v53  ;;  %v556_v20 = vand.u32 2147483647, %v371_v3  ;;  %v513_v29 = vadd.f32 %v512_v6, %v511_v39 }
  0xa9   : > { %v458_v23 = vadd.f32 %v457_v18, %v456_v14  ;;  %v578_v30 = vadd.f32 %v577_v5, %v576_v46  ;;  %v525_v38 = vsel %vm428_vm4, %v492_v35, 0.0  ;;  %v590_v31 = vsel %vm428_vm4, %v557_v17, 0.0 }
  0xaa   : > { %v663_v12 = vpop.permute.xlu2 %662  ;;  %v1409_v16 = vpop.permute.xlu1 %626  ;;  %v523_v37 = vsel %vm428_vm4, %v491_v19, 0.0  ;;  %v588_v1 = vsel %vm428_vm4, %v556_v20, 0.0  ;;  %v758_v39 = vsel %vm677_vm7, %v1250_v0, inf  ;;  %v1425_v43 = vsel %vm428_vm4, %v693_v58, -inf }
  0xab   : > { %v357_v22 = vpop.permute.xlu0 %356  ;;  %v460_v40 = vadd.f32 %v459_v8, %v458_v23  ;;  %v524_v42 = vadd.f32 %v523_v37, %v522_v34  ;;  %v589_v45 = vadd.f32 %v588_v1, %v587_v25  ;;  %v698_v52 = vsel %vm682_vm8, %v1351_v63, -inf }
  0xac   : > { %v374_v28 = vmul.f32 %v357_v22, %v1405_v7  ;;  %vm685_vm9 = vcmp.eq.s32.totalorder %v663_v12, 1  ;;  %v449_v5 = vadd.f32 %v448_v2, %v447_v50  ;;  %v514_v3 = vrot.slane %v513_v29, 1 }
  0xad   : > { %v526_v46 = vadd.f32 %v525_v38, %v524_v42  ;;  %v591_v47 = vadd.f32 %v590_v31, %v589_v45  ;;  %v462_v48 = vadd.f32 %v1363_v15, %v460_v40  ;;  %v579_v15 = vrot.slane %v578_v30, 1 }
  0xae   : > { %v463_v21 = vsel %vm428_vm4, %v374_v28, 0.0  ;;  %v494_v11 = vmul.f32 %v374_v28, %v1405_v7  ;;  %v559_v13 = vand.u32 2147483647, %v374_v28  ;;  %v1433_v58 = vsel %vm428_vm4, %v758_v39, inf }
  0xaf   : > { %v464_v60 = vadd.f32 %v463_v21, %v462_v48  ;;  %v528_v61 = vadd.f32 %v527_v49, %v526_v46  ;;  %v593_v51 = vadd.f32 %v592_v9, %v591_v47  ;;  %v763_v35 = vsel %vm682_vm8, %v1351_v63, inf }
  0xb0   : > { %v529_v54 = vsel %vm428_vm4, %v494_v11, 0.0  ;;  %v594_v56 = vsel %vm428_vm4, %v559_v13, 0.0  ;;  %v1439_v19 = vsel %vm428_vm4, %v698_v52, -inf  ;;  %v701_v49 = vsel %vm685_vm9, %v1388_v53, -inf }
  0xb1   : > { %v465_v14 = vrot.slane %v464_v60, 4  ;;  %v530_v17 = vadd.f32 %v529_v54, %v528_v61  ;;  %v595_v18 = vadd.f32 %v594_v56, %v593_v51  ;;  %vm673_vm10 = vcmp.eq.s32.totalorder %v1409_v16, 1  ;;  %v427_v16 = vld [vmem:[#allocation3] sm:$0x3] }
  0xb2   : > { %v648_v0 = vpop.permute.xlu2 %647  ;;  %v636_v6 = vpop.permute.xlu1 %635  ;;  %v515_v20 = vadd.f32 %v514_v3, %v513_v29  ;;  %v580_v22 = vadd.f32 %v579_v15, %v578_v30  ;;  %v1445_v63 = vsel %vm428_vm4, %v763_v35, inf  ;;  %v1449_v36 = vsel %vm685_vm9, %v1388_v53, inf  ;;  %v478_v3 = vld [vmem:[#allocation4] sm:$0x3] }
  0xb3   : > { %v633_v8 = vpop.permute.xlu0 %632  ;;  %vm676_vm11 = vcmp.eq.s32.totalorder %v636_v6, 1  ;;  %v466_v50 = vadd.f32 %v465_v14, %v464_v60  ;;  %v531_v9 = vrot.slane %v530_v17, 4  ;;  %v596_v2 = vrot.slane %v595_v18, 4  ;;  %v543_v6 = vld [vmem:[#allocation5] sm:$0x3] }
  0xb4   : > { %vm675_vm12 = vcmp.eq.s32.totalorder %v633_v8, 1  ;;  %vm680_vm13 = vcmp.eq.s32.totalorder %v648_v0, 1  ;;  %v1452_v28 = vsel %vm428_vm4, %v701_v49, -inf  ;;  %v689_v37 = vsel %vm673_vm10, %v1255_v24, -inf }
  0xb5   : > { %v467_v23 = vrot.slane %v466_v50, 2  ;;  %v532_v34 = vadd.f32 %v531_v9, %v530_v17  ;;  %v597_v25 = vadd.f32 %v596_v2, %v595_v18  ;;  %v691_v29 = vsel %vm675_vm12, %v1262_v27, -inf }
  0xb6   : > { %v692_v30 = vsel %vm676_vm11, %v1271_v32, -inf  ;;  %v756_v38 = vsel %vm675_vm12, %v1262_v27, inf  ;;  %v754_v45 = vsel %vm673_vm10, %v1255_v24, inf  ;;  %v696_v31 = vsel %vm680_vm13, %v1298_v59, -inf }
  0xb7   : > { %v468_v12 = vadd.f32 %v467_v23, %v466_v50  ;;  %v533_v53 = vrot.slane %v532_v34, 2  ;;  %v598_v1 = vrot.slane %v597_v25, 2  ;;  %v761_v21 = vsel %vm680_vm13, %v1298_v59, inf }
  0xb8   : > { %v1474_v27 = vsel %vm428_vm4, %v691_v29, -inf  ;;  %v1477_v47 = vsel %vm428_vm4, %v689_v37, -inf  ;;  %v1480_v48 = vsel %vm428_vm4, %v756_v38, inf  ;;  %v709_v24 = vsel %vm428_vm4, %v692_v30, -inf }
  0xb9   : > { %v469_v13 = vrot.slane %v468_v12, 1  ;;  %v534_v39 = vadd.f32 %v533_v53, %v532_v34  ;;  %v599_v46 = vadd.f32 %v598_v1, %v597_v25  ;;  %v757_v59 = vsel %vm676_vm11, %v1271_v32, inf }
  0xba   : > { %v1463_v40 = vpop.permute.xlu2 %825  ;;  %v1465_v42 = vpop.permute.xlu1 %650  ;;  %v1486_v60 = vsel %vm428_vm4, %v754_v45, inf  ;;  %v1489_v61 = vsel %vm428_vm4, %v696_v31, -inf  ;;  %v1492_v51 = vsel %vm428_vm4, %v761_v21, inf  ;;  %v708_v0 = vmax.f32 %v1477_v47, %v1474_v27 }
  0xbb   : > { %v642_v11 = vpop.permute.xlu0 %641  ;;  %1037 = vrcp.f32 %v1463_v40  ;;  %v470_v52 = vadd.f32 %v469_v13, %v468_v12  ;;  %v535_v54 = vrot.slane %v534_v39, 1  ;;  %v600_v56 = vrot.slane %v599_v46, 1 }
  0xbc   : > { %vm678_vm14 = vcmp.eq.s32.totalorder %v642_v11, 1  ;;  %v710_v35 = vmax.f32 %v1392_v33, %v709_v24  ;;  %v773_v18 = vmin.f32 %v1486_v60, %v1480_v48  ;;  %v774_v49 = vsel %vm428_vm4, %v757_v59, inf }
  0xbd   : > { %v473_v32 = vsel %vm421_vm2, %v470_v52, %v449_v5  ;;  %v536_v15 = vadd.f32 %v535_v54, %v534_v39  ;;  %v601_v8 = vadd.f32 %v600_v56, %v599_v46  ;;  %v694_v50 = vsel %vm678_vm14, %v1259_v26, -inf }
  0xbe   : > { %v475_v17 = vadd.f32 %v473_v32, %v427_v16  ;;  %v837_v23 = vand.u32 2147483647, %v1463_v40  ;;  %v759_v37 = vsel %vm678_vm14, %v1259_v26, inf  ;;  %vm681_vm15 = vcmp.eq.s32.totalorder %v1465_v42, 1 }
  0xbf   : > { %v539_v9 = vsel %vm421_vm2, %v536_v15, %v515_v20  ;;  %v604_v2 = vsel %vm421_vm2, %v601_v8, %v580_v22  ;;  %v713_v30 = vsel %vm428_vm4, %v694_v50, -inf  ;;  %v839_v22 = vand.u32 2147483648, %v1463_v40 }
  0xc0   : > { %477 = vst.msk [vmem:[#allocation3] sm:$0x3] %vm225_vm5, %v475_v17  ;;  %v541_v33 = vadd.f32 %v539_v9, %v478_v3  ;;  %v606_v25 = vadd.f32 %v604_v2, %v543_v6  ;;  %v775_v12 = vmin.f32 %v1397_v57, %v774_v49  ;;  %vm833_vm3 = vweird.f32 %v1463_v40 }
  0xc1   : > { %v1038_v14 = vpop.eup %1037  ;;  %v778_v26 = vsel %vm428_vm4, %v759_v37, inf  ;;  %v697_v38 = vsel %vm681_vm15, %v1292_v55, -inf  ;;  %v714_v45 = vmax.f32 %v710_v35, %v713_v30  ;;  %vm1522_vm8 = vcmp.eq.f32.partialorder %v837_v23, 8.507059e+37 }
  0xc2   : > { %v829_v5 = vmul.f32 %v1038_v14, %v1463_v40  ;;  %v660_v34 = vpop.permute.xlu1 %659  ;;  %542 = vst.msk [vmem:[#allocation4] sm:$0x3] %vm225_vm5, %v541_v33  ;;  %vm834_vm7 = vweird.f32 %v1038_v14  ;;  %v762_v31 = vsel %vm681_vm15, %v1292_v55, inf  ;;  %v840_v13 = vor.u32 1.1754944e-38, %v839_v22 }
  0xc3   : > { %v657_v29 = vpop.permute.xlu0 %656  ;;  %vm684_vm6 = vcmp.eq.s32.totalorder %v660_v34, 1  ;;  %607 = vst.msk [vmem:[#allocation5] sm:$0x3] %vm225_vm5, %v606_v25  ;;  %v779_v24 = vmin.f32 %v775_v12, %v778_v26  ;;  %vm835_vm9 = vmor %vm833_vm3, %vm834_vm7  ;;  %v726_v59 = vsel %vm428_vm4, %v697_v38, -inf  ;;  %v791_v42 = vsel %vm428_vm4, %v762_v31, inf }
  0xc4   : > { %v830_v20 = vsub.f32 1.0, %v829_v5  ;;  %vm683_vm0 = vcmp.eq.s32.totalorder %v657_v29, 1  ;;  %v700_v46 = vsel %vm684_vm6, %v1315_v10, -inf  ;;  %v1067_v54 = vmov -inf  }
  0xc5   : > { %v699_v53 = vsel %vm683_vm0, %v1348_v62, -inf  ;;  %v764_v21 = vsel %vm683_vm0, %v1348_v62, inf  ;;  %v765_v62 = vsel %vm684_vm6, %v1315_v10, inf  ;;  %229 = vst.msk [vmem:[#allocation6] sm:$0x3] %vm225_vm5, %v1067_v54  ;;  %v730_v6 = vsel %vm428_vm4, %v700_v46, -inf }
  0xc6   : > { %v831_v1 = vmul.f32 %v1038_v14, %v830_v20  ;;  %v728_v39 = vsel %vm428_vm4, %v699_v53, -inf  ;;  %v793_v55 = vsel %vm428_vm4, %v764_v21, inf  ;;  %v1068_v15 = vmov inf  }
  0xc7   : > { %v1542_v56 = vld [vmem:[#allocation3] sm:$0x3]  ;;  %v729_v3 = vmax.f32 %v726_v59, %v728_v39  ;;  %230 = vst.msk [vmem:[#allocation7] sm:$0x3] %vm225_vm5, %v1068_v15  ;;  %v712_v50 = vmax.f32 %v708_v0, %v1425_v43  ;;  %v794_v2 = vmin.f32 %v791_v42, %v793_v55  ;;  %v795_v5 = vsel %vm428_vm4, %v765_v62, inf }
  0xc8   : > { %v832_v11 = vadd.f32 %v1038_v14, %v831_v1  ;;  %v777_v23 = vmin.f32 %v773_v18, %v1433_v58  ;;  %v718_v34 = vmax.f32 %v714_v45, %v1489_v61  ;;  %v783_v47 = vmin.f32 %v779_v24, %v1492_v51 }
  0xc9   : > { %v797_v58 = vsel %vm428_vm4, %v1449_v36, inf  ;;  %v731_v60 = vmax.f32 %v1439_v19, %v730_v6  ;;  %v796_v61 = vmin.f32 %v1445_v63, %v795_v5  ;;  %v733_v25 = vmax.f32 %v729_v3, %v1452_v28 }
  0xca   : > { %v836_v16 = vsel %vm835_vm9, %v1038_v14, %v832_v11  ;;  %v645_v52 = vpop.permute.xlu1 %644  ;;  %v893_v14 = vld [vmem:[#allocation5] sm:$0x3]  ;;  %v798_v37 = vmin.f32 %v794_v2, %v797_v58 }
  0xcb   : > { %v1546_v40 = vsel %vm1522_vm8, %v840_v13, %v836_v16  ;;  %v666_v32 = vpop.permute.xlu0 %665  ;;  %vm679_vm10 = vcmp.eq.s32.totalorder %v645_v52, 1  ;;  %897 = vst.msk [vmem:[%s1557_s24 + $0x5] sm:$0x1] %vm871_vm1, %v893_v14 }
  0xcc   : > { %v842_v10 = vmul.f32 %v1546_v40, %v1542_v56  ;;  %vm686_vm11 = vcmp.eq.s32.totalorder %v666_v32, 1  ;;  %v695_v8 = vsel %vm679_vm10, %v1302_v4, -inf  ;;  %v760_v35 = vsel %vm679_vm10, %v1302_v4, inf }
  0xcd   : > { %v702_v17 = vsel %vm686_vm11, %v1375_v41, -inf  ;;  %v767_v49 = vsel %vm686_vm11, %v1375_v41, inf  ;;  %v715_v4 = vsel %vm428_vm4, %v695_v8, -inf  ;;  %v895_v41 = vrot.slane %v893_v14, 1 }
  0xce   : > { %v869_v9 = vrot.slane %v842_v10, 1  ;;  %872 = vst.msk [vmem:[%s1557_s24] sm:$0x1] %vm871_vm1, %v842_v10  ;;  %v716_v43 = vmax.f32 %v712_v50, %v715_v4  ;;  %v780_v27 = vsel %vm428_vm4, %v760_v35, inf  ;;  %v734_v0 = vsel %vm428_vm4, %v702_v17, -inf }
  0xcf   : > { %874 = vst.msk [vmem:[%s1557_s24 + $0x1] sm:$0x1] %vm871_vm1, %v842_v10  ;;  %v799_v33 = vsel %vm428_vm4, %v767_v49, inf  ;;  %v781_v48 = vmin.f32 %v777_v23, %v780_v27  ;;  %v735_v30 = vmax.f32 %v731_v60, %v734_v0  ;;  %v844_v49 = vmul.f32 %v1542_v56, %v1542_v56 }
  0xd0   : > { %873 = vst.msk [vmem:[%s1557_s24 + $0x8] sm:$0x1] %vm871_vm1, %v869_v9  ;;  %v719_v18 = vmax.f32 %v716_v43, %v718_v34  ;;  %v800_v20 = vmin.f32 %v796_v61, %v799_v33  ;;  %v753_v34 = vld [vmem:[#allocation7] sm:$0x3] }
  0xd1   : > { %875 = vst.msk [vmem:[%s1557_s24 + $0x9] sm:$0x1] %vm871_vm1, %v869_v9  ;;  %v784_v51 = vmin.f32 %v781_v48, %v783_v47  ;;  %v608_v9 = vld [vmem:[#allocation6] sm:$0x3]  ;;  %v845_v23 = vmul.f32 %v844_v49, %v1546_v40  ;;  %v843_v40 = vld [vmem:[#allocation4] sm:$0x3] }
  0xd2   : > { %v672_v29 = vpop.permute.xlu1 %671  ;;  %898 = vst.msk [vmem:[%s1557_s24 + $0xd] sm:$0x1] %vm871_vm1, %v895_v41  ;;  %v720_v22 = vrot.slane %v719_v18, 4 }
  0xd3   : > { %v669_v36 = vpop.permute.xlu0 %668  ;;  %vm688_vm12 = vcmp.eq.s32.totalorder %v672_v29, 1  ;;  %v785_v12 = vrot.slane %v784_v51, 4 }
  0xd4   : > { %vm687_vm13 = vcmp.eq.s32.totalorder %v669_v36, 1  ;;  %v704_v19 = vsel %vm688_vm12, %v1405_v7, -inf  ;;  %v769_v63 = vsel %vm688_vm12, %v1405_v7, inf  ;;  %v721_v53 = vmax.f32 %v719_v18, %v720_v22 }
  0xd5   : > { %v703_v26 = vsel %vm687_vm13, %v1335_v44, -inf  ;;  %v768_v28 = vsel %vm687_vm13, %v1335_v44, inf  ;;  %v738_v1 = vsel %vm428_vm4, %v704_v19, -inf  ;;  %v786_v38 = vmin.f32 %v784_v51, %v785_v12 }
  0xd6   : > { %v736_v45 = vsel %vm428_vm4, %v703_v26, -inf  ;;  %v801_v57 = vsel %vm428_vm4, %v768_v28, inf  ;;  %v739_v31 = vmax.f32 %v735_v30, %v738_v1  ;;  %v803_v13 = vsel %vm428_vm4, %v769_v63, inf }
  0xd7   : > { %v737_v21 = vmax.f32 %v733_v25, %v736_v45  ;;  %v802_v11 = vmin.f32 %v798_v37, %v801_v57  ;;  %v804_v39 = vmin.f32 %v800_v20, %v803_v13  ;;  %v722_v46 = vrot.slane %v721_v53, 2 }
  0xd8   : > { %v787_v24 = vrot.slane %v786_v38, 2  ;;  %v846_v18 = vsub.f32 %v843_v40, %v845_v23 }
  0xd9   : > { %v740_v7 = vmax.f32 %v737_v21, %v739_v31  ;;  %v805_v59 = vmin.f32 %v802_v11, %v804_v39  ;;  %v723_v55 = vmax.f32 %v721_v53, %v722_v46 }
  0xda   : > { %v788_v52 = vmin.f32 %v786_v38, %v787_v24 }
  0xdb   : > { %v741_v16 = vrot.slane %v740_v7, 4  ;;  %v851_v42 = vpop.permute.xlu0 %850  ;;  %v806_v44 = vrot.slane %v805_v59, 4  ;;  %v724_v32 = vrot.slane %v723_v55, 1 }
  0xdc   : > { %1039 = vrcp.f32 %v851_v42  ;;  %v789_v8 = vrot.slane %v788_v52, 1  ;;  %v864_v27 = vand.u32 2147483648, %v851_v42  ;;  %v862_v33 = vand.u32 2147483647, %v851_v42 }
  0xdd   : > { %v742_v62 = vmax.f32 %v740_v7, %v741_v16  ;;  %v807_v54 = vmin.f32 %v805_v59, %v806_v44  ;;  %v725_v4 = vmax.f32 %v723_v55, %v724_v32  ;;  %vm858_vm14 = vweird.f32 %v851_v42 }
  0xde   : > { %v790_v41 = vmin.f32 %v788_v52, %v789_v8  ;;  %v865_v61 = vor.u32 1.1754944e-38, %v864_v27  ;;  %vm863_vm0 = vcmp.eq.f32.partialorder %v862_v33, 8.507059e+37 }
  0xdf   : > { %v743_v3 = vrot.slane %v742_v62, 2  ;;  %v808_v6 = vrot.slane %v807_v54, 2 }
  0xe1   : > { %v744_v15 = vmax.f32 %v742_v62, %v743_v3  ;;  %v809_v35 = vmin.f32 %v807_v54, %v808_v6 }
  0xe2   : > { %v1040_v10 = vpop.eup %1039 }
  0xe3   : > { %v745_v14 = vrot.slane %v744_v15, 1  ;;  %v854_v17 = vmul.f32 %v1040_v10, %v851_v42  ;;  %v810_v50 = vrot.slane %v809_v35, 1  ;;  %vm859_vm4 = vweird.f32 %v1040_v10 }
  0xe4   : > { %vm860_vm15 = vmor %vm858_vm14, %vm859_vm4 }
  0xe5   : > { %v746_v2 = vmax.f32 %v744_v15, %v745_v14  ;;  %v855_v5 = vsub.f32 1.0, %v854_v17  ;;  %v811_v43 = vmin.f32 %v809_v35, %v810_v50 }
  0xe7   : > { %v749_v47 = vsel %vm421_vm2, %v746_v2, %v725_v4  ;;  %v856_v0 = vmul.f32 %v1040_v10, %v855_v5  ;;  %v814_v56 = vsel %vm421_vm2, %v811_v43, %v790_v41 }
  0xe8   : > { %v751_v48 = vmax.f32 %v608_v9, %v749_v47  ;;  %v816_v58 = vmin.f32 %v753_v34, %v814_v56 }
  0xe9   : > { %v857_v60 = vadd.f32 %v1040_v10, %v856_v0 }
  0xea   : > { %752 = vst.msk [vmem:[#allocation6] sm:$0x3] %vm225_vm5, %v751_v48 }
  0xeb   : > { %817 = vst.msk [vmem:[#allocation7] sm:$0x3] %vm225_vm5, %v816_v58  ;;  %v861_v51 = vsel %vm860_vm15, %v1040_v10, %v857_v60 }
  0xec   : > { %v866_v25 = vsel %vm863_vm0, %v865_v61, %v861_v51 }
  0xed   : > { %v867_v37 = vmul.f32 %v866_v25, %v846_v18 }
  0xef   : > { %v877_v29 = vrot.slane %v867_v37, 1  ;;  %879 = vst.msk [vmem:[%s1557_s24 + $0x2] sm:$0x1] %vm871_vm1, %v867_v37 }
  0xf1   : > { %v881_v30 = vld [vmem:[#allocation6] sm:$0x3]  ;;  %880 = vst.msk [vmem:[%s1557_s24 + $0xa] sm:$0x1] %vm871_vm1, %v877_v29 }
  0xf2   : > { %v883_v20 = vrot.slane %v881_v30, 1  ;;  %885 = vst.msk [vmem:[%s1557_s24 + $0x3] sm:$0x1] %vm871_vm1, %v881_v30  ;;  %v887_v22 = vld [vmem:[#allocation7] sm:$0x3] }
  0xf3   : > { %v889_v36 = vrot.slane %v887_v22, 1  ;;  %891 = vst.msk [vmem:[%s1557_s24 + $0x4] sm:$0x1] %vm871_vm1, %v887_v22 }
  0xf4   : > { %886 = vst.msk [vmem:[%s1557_s24 + $0xb] sm:$0x1] %vm871_vm1, %v883_v20 }
  0xf5   : > { %892 = vst.msk [vmem:[%s1557_s24 + $0xc] sm:$0x1] %vm871_vm1, %v889_v36 }
  0xf6 PF: > { %s12_s11 = sadd.s32 1, %s1063_s11   ;;  %s1634_s9 = smov %s1059_s10 }
  0xf7   : > { %p9_p5 = scmp.ge.s32.totalorder %s12_s11, 4   ;;  %s1635_s10 = smov %s1637_s12 }
  0xf9   :  { %11 = sbr.rel (!%p9_p5) target bundleno = 2 (0x2), region = 69 }

</bundles_post_ra>
